<compile_context>
chip_gen: v7x
topology: tpu7x:2x2x1
jax: 0.10.0
libtpu: 0.0.40
codegen_flags: <defaults>
</compile_context>

<pallas_src>
import jax
import jax.numpy as jnp
from jax import lax
from jax.experimental import pallas as pl
from jax.experimental.pallas import tpu as pltpu


def _round_up(a, b):
    return ((a + b - 1) // b) * b


def pfn_kernel(x_ref, batch_ref,
               pw0, pb0, pw1, pb1, pw2, pb2,
               fw0, fb0, fw1, fb1, fw2, fb2,
               out_ref, acc_ref):
    k = pl.program_id(0)
    tile_n = batch_ref.shape[0]
    b_pad = acc_ref.shape[1]

    @pl.when(k == 0)
    def _():
        acc_ref[...] = jnp.zeros_like(acc_ref)

    # ---- Phi MLP per node, transposed layout: h is (C, TILE_N), nodes on lanes ----
    h = x_ref[...]                                                  # (Cin, TILE_N) bf16
    for i, (w, b) in enumerate(((pw0, pb0), (pw1, pb1), (pw2, pb2))):
        h = jnp.dot(w[...], h, preferred_element_type=jnp.float32) + b[...]
        if i < 2:
            h = jnp.maximum(h, 0.0)                                 # f32 VPU (v5e safe)
        h = h.astype(jnp.bfloat16)                                  # bf16 MXU operand

    # ---- global_add_pool: segment-sum via in-kernel one-hot matmul on the MXU ----
    # sel[n, g] = 1 iff node n belongs to graph g; padded nodes carry id -1 -> all-zero row;
    # padded graph columns never match any real id -> all-zero column.
    sel = (batch_ref[...] ==
           lax.broadcasted_iota(jnp.int32, (tile_n, b_pad), 1)
           ).astype(jnp.bfloat16)                                   # (TILE_N, B_pad)
    acc_ref[...] += jnp.dot(h, sel, preferred_element_type=jnp.float32)  # (Cphi, B_pad) f32

    # ---- F MLP on pooled graph features + lane-dense store, only on the last tile ----
    @pl.when(k == pl.num_programs(0) - 1)
    def _():
        g = acc_ref[...]                                            # (Cphi, B_pad) f32
        for i, (w, b) in enumerate(((fw0, fb0), (fw1, fb1), (fw2, fb2))):
            g = jnp.dot(w[...], g.astype(jnp.bfloat16),
                        preferred_element_type=jnp.float32) + b[...]
            if i < 2:
                g = jnp.maximum(g, 0.0)
        out_ref[...] = g.astype(out_ref.dtype)                      # (score_pad, B_pad)


def particle_flow_network(x, edge_index, batch, num_graphs,
                          phi_params, f_params, *, tile_n=512):
    """x: (N, Cin) f32; batch: (N,) int graph ids.

    phi_params / f_params: lists of (W, b) with W in PyTorch (out, in) layout
    and b of shape (out, 1), three Linear layers each (num_layers=2).
    tile_n: requested node-tile size (multiple of 128); clamped to the padded
    node count so tiny inputs do not over-pad.  512 keeps the mem-bound node
    stream near HBM roofline on v5e/v6e/v7x while staying far under VMEM.
    """
    del edge_index  # PhiMessagePassing.update() discards aggr_out -> output is phi(x) only.
    assert len(phi_params) == 3 and len(f_params) == 3

    n, cin = x.shape
    cphi = phi_params[-1][0].shape[0]
    score_dim = f_params[-1][0].shape[0]

    # Lane-dense graph axis (unmasked accumulator/output stores), sublane-aligned score rows.
    b_pad = _round_up(max(num_graphs, 1), 128)
    score_pad = _round_up(score_dim, 8)

    eff_tile = max(128, min(tile_n, _round_up(n, 128)))
    n_pad = _round_up(max(n, 1), eff_tile)
    n_tiles = n_pad // eff_tile

    # Transposed, lane-dense node layout: channels on sublanes, nodes on the 128-lane axis.
    x_t = jnp.zeros((cin, n_pad), jnp.bfloat16).at[:, :n].set(x.T.astype(jnp.bfloat16))
    # Padded nodes get graph id -1 so they never match any graph in the one-hot.
    batch_col = jnp.full((n_pad, 1), -1, jnp.int32).at[:n, 0].set(batch.astype(jnp.int32))

    # Zero-pad the final F layer to score_pad output rows (store stays exact).
    fw_last, fb_last = f_params[-1]
    fw_last_p = jnp.zeros((score_pad, fw_last.shape[1]), fw_last.dtype).at[:score_dim].set(fw_last)
    fb_last_p = jnp.zeros((score_pad, 1), fb_last.dtype).at[:score_dim].set(fb_last)
    f_params_p = list(f_params[:-1]) + [(fw_last_p, fb_last_p)]

    weight_ops = []
    for w, b in list(phi_params) + f_params_p:
        weight_ops.append(w.astype(jnp.bfloat16))   # MXU operand
        weight_ops.append(b.astype(jnp.float32))    # f32 bias (epilogue)

    operands = [x_t, batch_col] + weight_ops
    in_specs = ([pl.BlockSpec((cin, eff_tile), lambda k: (0, k)),
                 pl.BlockSpec((eff_tile, 1), lambda k: (k, 0))]
                + [pl.BlockSpec(a.shape, lambda k: (0, 0)) for a in weight_ops])

    ph = phi_params[0][0].shape[0]   # Phi hidden width
    fh = f_params[0][0].shape[0]     # F hidden width
    flops = (2 * n_pad * (cin * ph + ph * ph + ph * cphi + cphi * b_pad)
             + 2 * b_pad * (cphi * fh + fh * fh + fh * score_pad))
    bytes_accessed = (x_t.size * 2 + batch_col.size * 4
                      + sum(int(a.size) * a.dtype.itemsize for a in weight_ops)
                      + b_pad * score_pad * 4)

    out_t = pl.pallas_call(
        pfn_kernel,
        out_shape=jax.ShapeDtypeStruct((score_pad, b_pad), jnp.float32),
        grid=(n_tiles,),
        in_specs=in_specs,
        out_specs=pl.BlockSpec((score_pad, b_pad), lambda k: (0, 0)),
        scratch_shapes=[pltpu.VMEM((cphi, b_pad), jnp.float32)],
        compiler_params=pltpu.CompilerParams(
            dimension_semantics=("arbitrary",),          # N is the pooled-sum reduction axis
            vmem_limit_bytes=32 * 1024 * 1024),
        cost_estimate=pl.CostEstimate(flops=int(flops), transcendentals=0,
                                      bytes_accessed=int(bytes_accessed)),
    )(*operands)

    return out_t[:score_dim, :num_graphs].T   # (num_graphs, score_dim)


def _init_linear(key, fan_in, fan_out):
    kw, kb = jax.random.split(key)
    bound = 1.0 / jnp.sqrt(jnp.float32(fan_in))
    w = jax.random.uniform(kw, (fan_out, fan_in), jnp.float32, -bound, bound)  # (out, in)
    b = jax.random.uniform(kb, (fan_out, 1), jnp.float32, -bound, bound)       # (out, 1)
    return w, b


def _init_mlp(key, in_ch, hidden_ch, num_layers, out_ch):
    # num_layers=2 -> Linear(in,h), Linear(h,h), Linear(h,out)
    dims = [in_ch] + [hidden_ch] * num_layers + [out_ch]
    keys = jax.random.split(key, len(dims) - 1)
    return [_init_linear(k, dims[i], dims[i + 1]) for i, k in enumerate(keys)]


def _reference(x, batch, num_graphs, phi_params, f_params):
    h = x
    for i, (w, b) in enumerate(phi_params):
        h = h @ w.T + b[:, 0]
        if i < len(phi_params) - 1:
            h = jnp.maximum(h, 0.0)
    onehot = (jnp.arange(num_graphs)[:, None] == batch[None, :]).astype(h.dtype)
    pooled = onehot @ h
    g = pooled
    for i, (w, b) in enumerate(f_params):
        g = g @ w.T + b[:, 0]
        if i < len(f_params) - 1:
            g = jnp.maximum(g, 0.0)
    return g


if __name__ == "__main__":
    key = jax.random.PRNGKey(0)
    k_x, k_phi, k_f = jax.random.split(key, 3)

    # Small shapes consistent with the module's forward.
    num_nodes = 16        # total particles across all graphs
    in_channel = 4        # parameters['Phi']['in_channel']
    phi_hidden = 32       # parameters['Phi']['hidden_channel']
    phi_layers = 2        # parameters['Phi']['num_layers']
    phi_out = 16          # parameters['Phi']['out_channel'] == parameters['F']['in_channel']
    f_hidden = 32         # parameters['F']['hidden_channel']
    f_layers = 2          # parameters['F']['num_layers']
    score_dim = 3
    num_graphs = 2

    x = jax.random.normal(k_x, (num_nodes, in_channel), jnp.float32)
    batch = jnp.concatenate([jnp.zeros(8, jnp.int32), jnp.ones(8, jnp.int32)])
    # Dummy per-graph edge_index (unused by the forward output).
    src = jnp.repeat(jnp.arange(num_nodes, dtype=jnp.int32), 2)
    dst = jnp.tile(jnp.arange(num_nodes, dtype=jnp.int32), 2)
    edge_index = jnp.stack([src, dst], axis=0)

    phi_params = _init_mlp(k_phi, in_channel, phi_hidden, phi_layers, phi_out)
    f_params = _init_mlp(k_f, phi_out, f_hidden, f_layers, score_dim)

    out = particle_flow_network(x, edge_index, batch, num_graphs,
                                phi_params, f_params)
    out = jax.block_until_ready(out)

    ref = _reference(x, batch, num_graphs, phi_params, f_params)
    assert out.shape == (num_graphs, score_dim)
    # bf16 MXU path vs f32 reference -> loose tolerance; segment-sum itself is exact (0/1, f32 acc).
    assert jnp.allclose(out, ref, atol=5e-2, rtol=5e-2), float(jnp.max(jnp.abs(out - ref)))

    print("KERNEL_OK")
</pallas_src>

<mosaic_0001>
module attributes {stable_mosaic.version = 11 : i64} {
  func.func @pfn_kernel(%arg0: i32, %arg1: memref<4x128xbf16, #tpu.memory_space<vmem>>, %arg2: memref<128x1xi32, #tpu.memory_space<vmem>>, %arg3: memref<32x4xbf16, #tpu.memory_space<vmem>>, %arg4: memref<32x1xf32, #tpu.memory_space<vmem>>, %arg5: memref<32x32xbf16, #tpu.memory_space<vmem>>, %arg6: memref<32x1xf32, #tpu.memory_space<vmem>>, %arg7: memref<16x32xbf16, #tpu.memory_space<vmem>>, %arg8: memref<16x1xf32, #tpu.memory_space<vmem>>, %arg9: memref<32x16xbf16, #tpu.memory_space<vmem>>, %arg10: memref<32x1xf32, #tpu.memory_space<vmem>>, %arg11: memref<32x32xbf16, #tpu.memory_space<vmem>>, %arg12: memref<32x1xf32, #tpu.memory_space<vmem>>, %arg13: memref<8x32xbf16, #tpu.memory_space<vmem>>, %arg14: memref<8x1xf32, #tpu.memory_space<vmem>>, %arg15: memref<8x128xf32, #tpu.memory_space<vmem>>, %arg16: memref<16x128xf32, #tpu.memory_space<vmem>>) attributes {dimension_semantics = [#tpu.dimension_semantics<arbitrary>], iteration_bounds = array<i64: 1>, scalar_prefetch = 0 : i64, scratch_operands = 1 : i64, tpu.core_type = #tpu.core_type<tc>, window_params = [{transform_indices = @transform_0, window_bounds = array<i64: 4, 128>}, {transform_indices = @transform_1, window_bounds = array<i64: 128, 1>}, {pipeline_mode = #tpu.pipeline_mode<synchronous>, transform_indices = @transform_2, window_bounds = array<i64: 32, 4>}, {pipeline_mode = #tpu.pipeline_mode<synchronous>, transform_indices = @transform_3, window_bounds = array<i64: 32, 1>}, {pipeline_mode = #tpu.pipeline_mode<synchronous>, transform_indices = @transform_4, window_bounds = array<i64: 32, 32>}, {pipeline_mode = #tpu.pipeline_mode<synchronous>, transform_indices = @transform_5, window_bounds = array<i64: 32, 1>}, {pipeline_mode = #tpu.pipeline_mode<synchronous>, transform_indices = @transform_6, window_bounds = array<i64: 16, 32>}, {pipeline_mode = #tpu.pipeline_mode<synchronous>, transform_indices = @transform_7, window_bounds = array<i64: 16, 1>}, {pipeline_mode = #tpu.pipeline_mode<synchronous>, transform_indices = @transform_8, window_bounds = array<i64: 32, 16>}, {pipeline_mode = #tpu.pipeline_mode<synchronous>, transform_indices = @transform_9, window_bounds = array<i64: 32, 1>}, {pipeline_mode = #tpu.pipeline_mode<synchronous>, transform_indices = @transform_10, window_bounds = array<i64: 32, 32>}, {pipeline_mode = #tpu.pipeline_mode<synchronous>, transform_indices = @transform_11, window_bounds = array<i64: 32, 1>}, {pipeline_mode = #tpu.pipeline_mode<synchronous>, transform_indices = @transform_12, window_bounds = array<i64: 8, 32>}, {pipeline_mode = #tpu.pipeline_mode<synchronous>, transform_indices = @transform_13, window_bounds = array<i64: 8, 1>}, {pipeline_mode = #tpu.pipeline_mode<synchronous>, transform_indices = @transform_14, window_bounds = array<i64: 8, 128>}]} {
    %c0_i32 = arith.constant 0 : i32
    %0 = arith.cmpi eq, %arg0, %c0_i32 : i32
    %1 = arith.extui %0 : i1 to i32
    %c0_i32_0 = arith.constant 0 : i32
    %2 = arith.cmpi ne, %1, %c0_i32_0 : i32
    scf.if %2 {
      %cst_27 = arith.constant 0.000000e+00 : f32
      %40 = vector.broadcast %cst_27 : f32 to vector<16x128xf32>
      %c0_28 = arith.constant 0 : index
      %c0_29 = arith.constant 0 : index
      %41 = vector.load %arg16[%c0_28, %c0_29] : memref<16x128xf32, #tpu.memory_space<vmem>>, vector<16x128xf32>
      tpu.vector_store %arg16[%c0_28, %c0_29], %40 {strides = array<i32>} : memref<16x128xf32, #tpu.memory_space<vmem>>, vector<16x128xf32>,
    } else {
    }
    %c0 = arith.constant 0 : index
    %c0_1 = arith.constant 0 : index
    %3 = vector.load %arg1[%c0, %c0_1] : memref<4x128xbf16, #tpu.memory_space<vmem>>, vector<4x128xbf16>
    %c0_2 = arith.constant 0 : index
    %c0_3 = arith.constant 0 : index
    %4 = vector.load %arg3[%c0_2, %c0_3] : memref<32x4xbf16, #tpu.memory_space<vmem>>, vector<32x4xbf16>
    %cst = arith.constant dense<0.000000e+00> : vector<32x128xf32>
    %5 = tpu.matmul %4, %3, %cst {dimension_numbers = #tpu.dot_dimension_numbers<[1], [0], [0], [1], [0, 0, 1, 1], [], []>} : vector<32x4xbf16>, vector<4x128xbf16>, vector<32x128xf32> -> vector<32x128xf32>
    %c0_4 = arith.constant 0 : index
    %c0_5 = arith.constant 0 : index
    %6 = vector.load %arg4[%c0_4, %c0_5] : memref<32x1xf32, #tpu.memory_space<vmem>>, vector<32x1xf32>
    %7 = vector.broadcast %6 : vector<32x1xf32> to vector<32x128xf32>
    %8 = arith.addf %5, %7 : vector<32x128xf32>
    %cst_6 = arith.constant 0.000000e+00 : f32
    %9 = vector.broadcast %cst_6 : f32 to vector<32x128xf32>
    %10 = arith.maximumf %8, %9 : vector<32x128xf32>
    %11 = arith.truncf %10 : vector<32x128xf32> to vector<32x128xbf16>
    %c0_7 = arith.constant 0 : index
    %c0_8 = arith.constant 0 : index
    %12 = vector.load %arg5[%c0_7, %c0_8] : memref<32x32xbf16, #tpu.memory_space<vmem>>, vector<32x32xbf16>
    %cst_9 = arith.constant dense<0.000000e+00> : vector<32x128xf32>
    %13 = tpu.matmul %12, %11, %cst_9 {dimension_numbers = #tpu.dot_dimension_numbers<[1], [0], [0], [1], [0, 0, 1, 1], [], []>} : vector<32x32xbf16>, vector<32x128xbf16>, vector<32x128xf32> -> vector<32x128xf32>
    %c0_10 = arith.constant 0 : index
    %c0_11 = arith.constant 0 : index
    %14 = vector.load %arg6[%c0_10, %c0_11] : memref<32x1xf32, #tpu.memory_space<vmem>>, vector<32x1xf32>
    %15 = vector.broadcast %14 : vector<32x1xf32> to vector<32x128xf32>
    %16 = arith.addf %13, %15 : vector<32x128xf32>
    %cst_12 = arith.constant 0.000000e+00 : f32
    %17 = vector.broadcast %cst_12 : f32 to vector<32x128xf32>
    %18 = arith.maximumf %16, %17 : vector<32x128xf32>
    %19 = arith.truncf %18 : vector<32x128xf32> to vector<32x128xbf16>
    %c0_13 = arith.constant 0 : index
    %c0_14 = arith.constant 0 : index
    %20 = vector.load %arg7[%c0_13, %c0_14] : memref<16x32xbf16, #tpu.memory_space<vmem>>, vector<16x32xbf16>
    %cst_15 = arith.constant dense<0.000000e+00> : vector<16x128xf32>
    %21 = tpu.matmul %20, %19, %cst_15 {dimension_numbers = #tpu.dot_dimension_numbers<[1], [0], [0], [1], [0, 0, 1, 1], [], []>} : vector<16x32xbf16>, vector<32x128xbf16>, vector<16x128xf32> -> vector<16x128xf32>
    %c0_16 = arith.constant 0 : index
    %c0_17 = arith.constant 0 : index
    %22 = vector.load %arg8[%c0_16, %c0_17] : memref<16x1xf32, #tpu.memory_space<vmem>>, vector<16x1xf32>
    %23 = vector.broadcast %22 : vector<16x1xf32> to vector<16x128xf32>
    %24 = arith.addf %21, %23 : vector<16x128xf32>
    %25 = arith.truncf %24 : vector<16x128xf32> to vector<16x128xbf16>
    %c0_18 = arith.constant 0 : index
    %c0_19 = arith.constant 0 : index
    %26 = vector.load %arg2[%c0_18, %c0_19] : memref<128x1xi32, #tpu.memory_space<vmem>>, vector<128x1xi32>
    %27 = tpu.iota {dimensions = array<i32: 1>} : vector<128x128xi32>
    %28 = vector.broadcast %26 : vector<128x1xi32> to vector<128x128xi32>
    %29 = arith.cmpi eq, %28, %27 : vector<128x128xi32>
    %30 = arith.extui %29 : vector<128x128xi1> to vector<128x128xi32>
    %31 = arith.sitofp %30 : vector<128x128xi32> to vector<128x128xf32>
    %32 = arith.truncf %31 : vector<128x128xf32> to vector<128x128xbf16>
    %c0_20 = arith.constant 0 : index
    %c0_21 = arith.constant 0 : index
    %33 = vector.load %arg16[%c0_20, %c0_21] : memref<16x128xf32, #tpu.memory_space<vmem>>, vector<16x128xf32>
    %cst_22 = arith.constant dense<0.000000e+00> : vector<16x128xf32>
    %34 = tpu.matmul %25, %32, %cst_22 {dimension_numbers = #tpu.dot_dimension_numbers<[1], [0], [0], [1], [0, 0, 1, 1], [], []>} : vector<16x128xbf16>, vector<128x128xbf16>, vector<16x128xf32> -> vector<16x128xf32>
    %35 = arith.addf %33, %34 : vector<16x128xf32>
    %c0_23 = arith.constant 0 : index
    %c0_24 = arith.constant 0 : index
    %36 = vector.load %arg16[%c0_23, %c0_24] : memref<16x128xf32, #tpu.memory_space<vmem>>, vector<16x128xf32>
    tpu.vector_store %arg16[%c0_23, %c0_24], %35 {strides = array<i32>} : memref<16x128xf32, #tpu.memory_space<vmem>>, vector<16x128xf32>,
    %c0_i32_25 = arith.constant 0 : i32
    %37 = arith.cmpi eq, %arg0, %c0_i32_25 : i32
    %38 = arith.extui %37 : i1 to i32
    %c0_i32_26 = arith.constant 0 : i32
    %39 = arith.cmpi ne, %38, %c0_i32_26 : i32
    scf.if %39 {
      %c0_27 = arith.constant 0 : index
      %c0_28 = arith.constant 0 : index
      %40 = vector.load %arg16[%c0_27, %c0_28] : memref<16x128xf32, #tpu.memory_space<vmem>>, vector<16x128xf32>
      %c0_29 = arith.constant 0 : index
      %c0_30 = arith.constant 0 : index
      %41 = vector.load %arg9[%c0_29, %c0_30] : memref<32x16xbf16, #tpu.memory_space<vmem>>, vector<32x16xbf16>
      %42 = arith.truncf %40 : vector<16x128xf32> to vector<16x128xbf16>
      %cst_31 = arith.constant dense<0.000000e+00> : vector<32x128xf32>
      %43 = tpu.matmul %41, %42, %cst_31 {dimension_numbers = #tpu.dot_dimension_numbers<[1], [0], [0], [1], [0, 0, 1, 1], [], []>} : vector<32x16xbf16>, vector<16x128xbf16>, vector<32x128xf32> -> vector<32x128xf32>
      %c0_32 = arith.constant 0 : index
      %c0_33 = arith.constant 0 : index
      %44 = vector.load %arg10[%c0_32, %c0_33] : memref<32x1xf32, #tpu.memory_space<vmem>>, vector<32x1xf32>
      %45 = vector.broadcast %44 : vector<32x1xf32> to vector<32x128xf32>
      %46 = arith.addf %43, %45 : vector<32x128xf32>
      %cst_34 = arith.constant 0.000000e+00 : f32
      %47 = vector.broadcast %cst_34 : f32 to vector<32x128xf32>
      %48 = arith.maximumf %46, %47 : vector<32x128xf32>
      %c0_35 = arith.constant 0 : index
      %c0_36 = arith.constant 0 : index
      %49 = vector.load %arg11[%c0_35, %c0_36] : memref<32x32xbf16, #tpu.memory_space<vmem>>, vector<32x32xbf16>
      %50 = arith.truncf %48 : vector<32x128xf32> to vector<32x128xbf16>
      %cst_37 = arith.constant dense<0.000000e+00> : vector<32x128xf32>
      %51 = tpu.matmul %49, %50, %cst_37 {dimension_numbers = #tpu.dot_dimension_numbers<[1], [0], [0], [1], [0, 0, 1, 1], [], []>} : vector<32x32xbf16>, vector<32x128xbf16>, vector<32x128xf32> -> vector<32x128xf32>
      %c0_38 = arith.constant 0 : index
      %c0_39 = arith.constant 0 : index
      %52 = vector.load %arg12[%c0_38, %c0_39] : memref<32x1xf32, #tpu.memory_space<vmem>>, vector<32x1xf32>
      %53 = vector.broadcast %52 : vector<32x1xf32> to vector<32x128xf32>
      %54 = arith.addf %51, %53 : vector<32x128xf32>
      %cst_40 = arith.constant 0.000000e+00 : f32
      %55 = vector.broadcast %cst_40 : f32 to vector<32x128xf32>
      %56 = arith.maximumf %54, %55 : vector<32x128xf32>
      %c0_41 = arith.constant 0 : index
      %c0_42 = arith.constant 0 : index
      %57 = vector.load %arg13[%c0_41, %c0_42] : memref<8x32xbf16, #tpu.memory_space<vmem>>, vector<8x32xbf16>
      %58 = arith.truncf %56 : vector<32x128xf32> to vector<32x128xbf16>
      %cst_43 = arith.constant dense<0.000000e+00> : vector<8x128xf32>
      %59 = tpu.matmul %57, %58, %cst_43 {dimension_numbers = #tpu.dot_dimension_numbers<[1], [0], [0], [1], [0, 0, 1, 1], [], []>} : vector<8x32xbf16>, vector<32x128xbf16>, vector<8x128xf32> -> vector<8x128xf32>
      %c0_44 = arith.constant 0 : index
      %c0_45 = arith.constant 0 : index
      %60 = vector.load %arg14[%c0_44, %c0_45] : memref<8x1xf32, #tpu.memory_space<vmem>>, vector<8x1xf32>
      %61 = vector.broadcast %60 : vector<8x1xf32> to vector<8x128xf32>
      %62 = arith.addf %59, %61 : vector<8x128xf32>
      %c0_46 = arith.constant 0 : index
      %c0_47 = arith.constant 0 : index
      %63 = vector.load %arg15[%c0_46, %c0_47] : memref<8x128xf32, #tpu.memory_space<vmem>>, vector<8x128xf32>
      tpu.vector_store %arg15[%c0_46, %c0_47], %62 {strides = array<i32>} : memref<8x128xf32, #tpu.memory_space<vmem>>, vector<8x128xf32>,
    } else {
    }
    return
  }
  func.func @transform_0(%arg0: i32) -> (i32, i32) {
    %c0_i32 = arith.constant 0 : i32
    %c0_i32_0 = arith.constant 0 : i32
    return %c0_i32, %arg0 : i32, i32
  }
  func.func @transform_1(%arg0: i32) -> (i32, i32) {
    %c0_i32 = arith.constant 0 : i32
    %c0_i32_0 = arith.constant 0 : i32
    return %arg0, %c0_i32 : i32, i32
  }
  func.func @transform_2(%arg0: i32) -> (i32, i32) {
    %c0_i32 = arith.constant 0 : i32
    %c0_i32_0 = arith.constant 0 : i32
    %c0_i32_1 = arith.constant 0 : i32
    return %c0_i32, %c0_i32_0 : i32, i32
  }
  func.func @transform_3(%arg0: i32) -> (i32, i32) {
    %c0_i32 = arith.constant 0 : i32
    %c0_i32_0 = arith.constant 0 : i32
    %c0_i32_1 = arith.constant 0 : i32
    return %c0_i32, %c0_i32_0 : i32, i32
  }
  func.func @transform_4(%arg0: i32) -> (i32, i32) {
    %c0_i32 = arith.constant 0 : i32
    %c0_i32_0 = arith.constant 0 : i32
    %c0_i32_1 = arith.constant 0 : i32
    return %c0_i32, %c0_i32_0 : i32, i32
  }
  func.func @transform_5(%arg0: i32) -> (i32, i32) {
    %c0_i32 = arith.constant 0 : i32
    %c0_i32_0 = arith.constant 0 : i32
    %c0_i32_1 = arith.constant 0 : i32
    return %c0_i32, %c0_i32_0 : i32, i32
  }
  func.func @transform_6(%arg0: i32) -> (i32, i32) {
    %c0_i32 = arith.constant 0 : i32
    %c0_i32_0 = arith.constant 0 : i32
    %c0_i32_1 = arith.constant 0 : i32
    return %c0_i32, %c0_i32_0 : i32, i32
  }
  func.func @transform_7(%arg0: i32) -> (i32, i32) {
    %c0_i32 = arith.constant 0 : i32
    %c0_i32_0 = arith.constant 0 : i32
    %c0_i32_1 = arith.constant 0 : i32
    return %c0_i32, %c0_i32_0 : i32, i32
  }
  func.func @transform_8(%arg0: i32) -> (i32, i32) {
    %c0_i32 = arith.constant 0 : i32
    %c0_i32_0 = arith.constant 0 : i32
    %c0_i32_1 = arith.constant 0 : i32
    return %c0_i32, %c0_i32_0 : i32, i32
  }
  func.func @transform_9(%arg0: i32) -> (i32, i32) {
    %c0_i32 = arith.constant 0 : i32
    %c0_i32_0 = arith.constant 0 : i32
    %c0_i32_1 = arith.constant 0 : i32
    return %c0_i32, %c0_i32_0 : i32, i32
  }
  func.func @transform_10(%arg0: i32) -> (i32, i32) {
    %c0_i32 = arith.constant 0 : i32
    %c0_i32_0 = arith.constant 0 : i32
    %c0_i32_1 = arith.constant 0 : i32
    return %c0_i32, %c0_i32_0 : i32, i32
  }
  func.func @transform_11(%arg0: i32) -> (i32, i32) {
    %c0_i32 = arith.constant 0 : i32
    %c0_i32_0 = arith.constant 0 : i32
    %c0_i32_1 = arith.constant 0 : i32
    return %c0_i32, %c0_i32_0 : i32, i32
  }
  func.func @transform_12(%arg0: i32) -> (i32, i32) {
    %c0_i32 = arith.constant 0 : i32
    %c0_i32_0 = arith.constant 0 : i32
    %c0_i32_1 = arith.constant 0 : i32
    return %c0_i32, %c0_i32_0 : i32, i32
  }
  func.func @transform_13(%arg0: i32) -> (i32, i32) {
    %c0_i32 = arith.constant 0 : i32
    %c0_i32_0 = arith.constant 0 : i32
    %c0_i32_1 = arith.constant 0 : i32
    return %c0_i32, %c0_i32_0 : i32, i32
  }
  func.func @transform_14(%arg0: i32) -> (i32, i32) {
    %c0_i32 = arith.constant 0 : i32
    %c0_i32_0 = arith.constant 0 : i32
    %c0_i32_1 = arith.constant 0 : i32
    return %c0_i32, %c0_i32_0 : i32, i32
  }
}

</mosaic_0001>

<bundles_post_ra>
// kernel: tpu_custom_call.1
= control target key start
LH: loop header
LB: loop body
LE: loop exit
PB: predicated region body
PF: predicated region fallthrough
CT: control target
= control target key end

     0   :  { %vm101_vm0 = vcmask 1041408   ;;  %vm94_vm1 = vcmask 31744   ;;  %v948_v5 = vmov 0   ;;  %s1214_s0 = inlined_call_operand.vmem [shape: bf16[4,128], index: 0, kind: input, shape index: {}]   ;;  %s1215_s1 = inlined_call_operand.vmem [shape: s32[128,1], index: 1, kind: input, shape index: {}]   ;;  %s1216_s2 = inlined_call_operand.vmem [shape: bf16[32,4], index: 2, kind: input, shape index: {}]   ;;  %s1217_s3 = inlined_call_operand.vmem [shape: f32[32,1], index: 3, kind: input, shape index: {}]   ;;  %s1218_s4 = inlined_call_operand.vmem [shape: bf16[32,32], index: 4, kind: input, shape index: {}]   ;;  %s1219_s5 = inlined_call_operand.vmem [shape: f32[32,1], index: 5, kind: input, shape index: {}]   ;;  %s1220_s6 = inlined_call_operand.vmem [shape: bf16[16,32], index: 6, kind: input, shape index: {}]   ;;  %s1221_s7 = inlined_call_operand.vmem [shape: f32[16,1], index: 7, kind: input, shape index: {}]   ;;  %s1222_s8 = inlined_call_operand.vmem [shape: bf16[32,16], index: 8, kind: input, shape index: {}]   ;;  %s1223_s9 = inlined_call_operand.vmem [shape: f32[32,1], index: 9, kind: input, shape index: {}]   ;;  %s1224_s10 = inlined_call_operand.vmem [shape: bf16[32,32], index: 10, kind: input, shape index: {}]   ;;  %s1225_s11 = inlined_call_operand.vmem [shape: f32[32,1], index: 11, kind: input, shape index: {}]   ;;  %s1226_s12 = inlined_call_operand.vmem [shape: bf16[8,32], index: 12, kind: input, shape index: {}]   ;;  %s1227_s13 = inlined_call_operand.vmem [shape: f32[8,1], index: 13, kind: input, shape index: {}]   ;;  %s1228_s14 = inlined_call_operand.hbm [shape: f32[8,128], index: 14, kind: output, shape index: {}]  }
   0x1   :  { %v55_v0 = vld [vmem:[%s1214_s0] sm:$0x3]  ;;  %v916_v3 = vld [vmem:[%s1216_s2 + $0x8] sm:$0xff]   ;;  %913 = vset.pattern.permute.xlu0 %v948_v5  ;;  %914 = vset.pattern.permute.xlu1 %v948_v5  ;;  %v62_v6 = vld [vmem:[%s1217_s3 + $0x10] sm:$0xff] }
   0x2   :  { %v915_v1 = vld [vmem:[%s1216_s2] sm:$0xff]   ;;  %907 = vmatprep.subr.msk.bf16.mxu0 %vm101_vm0, %v55_v0  ;;  %v103_v2 = vsel %vm101_vm0, %v55_v0, 0  ;;  %76 = vperm.xlu1 %914, %v62_v6   ;;  %v61_v7 = vld [vmem:[%s1217_s3 + $0x8] sm:$0xff]  ;;  %v63_v8 = vld [vmem:[%s1217_s3 + $0x18] sm:$0xff] }
   0x3   :  { %844 = vmatpush3.bf16.msra.mxu0 %v103_v2  ;;  %845 = vmatprep.mubr.msk.bf16.mxu0 %vm94_vm1, %v915_v1  ;;  %v60_v4 = vld [vmem:[%s1217_s3] sm:$0xff]  ;;  %v165_v10 = vld [vmem:[%s1219_s5 + $0x8] sm:$0xff]  ;;  %v166_v11 = vld [vmem:[%s1219_s5 + $0x10] sm:$0xff] }
   0x4   :  { %66 = vperm.xlu0 %913, %v60_v4   ;;  %v164_v9 = vld [vmem:[%s1219_s5] sm:$0xff]  ;;  %v167_v12 = vld [vmem:[%s1219_s5 + $0x18] sm:$0xff]  ;;  %v325_v14 = vld [vmem:[%s1215_s1 + $0x8] sm:$0xff] }
   0x5   :  { %v324_v13 = vld [vmem:[%s1215_s1] sm:$0xff] }
   0x6   :  { %846 = vmatmul.mubr.msk.bf16.vlgmr.msra.gmra.mrb[0].mxu0 %vm94_vm1, %v916_v3  ;;  %81 = vperm.xlu1 %914, %v63_v8  }
   0x8   :  { %71 = vperm.xlu0 %913, %v61_v7  }
   0xa   :  { %175 = vperm.xlu1 %914, %v165_v10  }
   0xc   :  { %170 = vperm.xlu0 %913, %v164_v9  }
   0xe   :  { %185 = vperm.xlu1 %914, %v167_v12  }
  0x10   :  { %180 = vperm.xlu0 %913, %v166_v11  }
  0x11   :  { %19 = vsyncpa [#allocation4], 0  ;;  %v326_v15 = vld [vmem:[%s1215_s1 + $0x10] sm:$0xff]  ;;  %v327_v16 = vld [vmem:[%s1215_s1 + $0x18] sm:$0xff]  ;;  %vm198_vm2 = vcmask 261120   ;;  %v949_v41 = vmov 0.0   ;;  %v340_v2 = vlaneseq }
  0x12   :  { %346 = vperm.xlu1 %914, %v325_v14   ;;  %v328_v17 = vld [vmem:[%s1215_s1 + $0x20] sm:$0xff]  ;;  %v329_v18 = vld [vmem:[%s1215_s1 + $0x28] sm:$0xff]  ;;  %v330_v19 = vld [vmem:[%s1215_s1 + $0x30] sm:$0xff]  ;;  %857 = vmatprep.subr.bf16.mxu0 %v949_v41  ;;  %v950_v11 = vmov 1.0|1.0   ;;  %s952_s3 = smov [#allocation3]  }
  0x13   :  { %v331_v20 = vld [vmem:[%s1215_s1 + $0x38] sm:$0xff]  ;;  %v332_v21 = vld [vmem:[%s1215_s1 + $0x40] sm:$0xff]  ;;  %v333_v22 = vld [vmem:[%s1215_s1 + $0x48] sm:$0xff]  ;;  %v341_v5 = vand.u32 127, %v340_v2  ;;  %s755_s17 = sshll.u32 %s952_s3, 4  ;;  %s756_s17 = int_to_ptr.vmem [resolvable:$true] %s755_s17 }
  0x14   :  { %343 = vperm.xlu0 %913, %v324_v13   ;;  %v334_v23 = vld [vmem:[%s1215_s1 + $0x50] sm:$0xff]  ;;  %v335_v24 = vld [vmem:[%s1215_s1 + $0x58] sm:$0xff]  ;;  %v336_v25 = vld [vmem:[%s1215_s1 + $0x60] sm:$0xff]  ;;  %s924_s18 = scalar_lea.vmem %s756_s17, 128  ;;  %p929_p1 = scmp.lt.s32.totalorder %s756_s17, %s756_s17 }
  0x15   :  { %v337_v26 = vld [vmem:[%s1215_s1 + $0x68] sm:$0xff]  ;;  %v338_v27 = vld [vmem:[%s1215_s1 + $0x70] sm:$0xff]  ;;  %v339_v28 = vld [vmem:[%s1215_s1 + $0x78] sm:$0xff]  ;;  %p925_p0 = scmp.ne.s32.totalorder %s756_s17, %s924_s18  ;;  %p930_p2 = scmp.lt.s32.totalorder %s924_s18, %s924_s18 }
  0x16   :  { %352 = vperm.xlu1 %914, %v327_v16   ;;  %v262_v29 = vld [vmem:[%s1221_s7] sm:$0xff]  ;;  %v263_v30 = vld [vmem:[%s1221_s7 + $0x8] sm:$0xff]  ;;  %v505_v33 = vld [vmem:[%s1223_s9 + $0x10] sm:$0xff] }
  0x17   :  { %v503_v31 = vld [vmem:[%s1223_s9] sm:$0xff]  ;;  %v504_v32 = vld [vmem:[%s1223_s9 + $0x8] sm:$0xff]  ;;  %v506_v34 = vld [vmem:[%s1223_s9 + $0x18] sm:$0xff]  ;;  %p931_p3 = por %p930_p2, %p929_p1 }
  0x18   :  { %349 = vperm.xlu0 %913, %v326_v15   ;;  %v603_v35 = vld [vmem:[%s1225_s11] sm:$0xff]  ;;  %v604_v36 = vld [vmem:[%s1225_s11 + $0x8] sm:$0xff]  ;;  %v605_v37 = vld [vmem:[%s1225_s11 + $0x10] sm:$0xff] }
  0x19   :  { %v606_v38 = vld [vmem:[%s1225_s11 + $0x18] sm:$0xff]  ;;  %v699_v39 = vld [vmem:[%s1227_s13] sm:$0xff]  ;;  %v918_v8 = vld [vmem:[%s1218_s4 + $0x8] sm:$0xff]   ;;  %p932_p4 = pnand %p931_p3, %p925_p0 }
  0x1a   :  { %358 = vperm.xlu1 %914, %v329_v18   ;;  %v917_v40 = vld [vmem:[%s1218_s4] sm:$0xff]  }
  0x1b   :  { %853 = vmatprep.mubr.msk.bf16.mxu1 %vm198_vm2, %v917_v40 }
  0x1c   :  { %355 = vperm.xlu0 %913, %v328_v17  }
  0x1e   :  { %364 = vperm.xlu1 %914, %v331_v20  }
  0x20   :  { %361 = vperm.xlu0 %913, %v330_v19  }
  0x22   :  { %370 = vperm.xlu1 %914, %v333_v22  }
  0x24   :  { %367 = vperm.xlu0 %913, %v332_v21  }
  0x26   :  { %376 = vperm.xlu1 %914, %v335_v24  }
  0x28   :  { %373 = vperm.xlu0 %913, %v334_v23  }
  0x2a   :  { %382 = vperm.xlu1 %914, %v337_v26  }
  0x2c   :  { %379 = vperm.xlu0 %913, %v336_v25  }
  0x2e   :  { %388 = vperm.xlu1 %914, %v339_v28  }
  0x30   :  { %385 = vperm.xlu0 %913, %v338_v27  }
  0x32   :  { %271 = vperm.xlu1 %914, %v263_v30  }
  0x34   :  { %266 = vperm.xlu0 %913, %v262_v29  }
  0x36   :  { %514 = vperm.xlu1 %914, %v504_v32  }
  0x38   :  { %509 = vperm.xlu0 %913, %v503_v31  }
  0x3a   :  { %524 = vperm.xlu1 %914, %v506_v34   ;;  %v919_v34 = vld [vmem:[%s1220_s6] sm:$0xff]  }
  0x3c   :  { %519 = vperm.xlu0 %913, %v505_v33  }
  0x3e   :  { %614 = vperm.xlu1 %914, %v604_v36  }
  0x40   :  { %609 = vperm.xlu0 %913, %v603_v35  }
  0x42   :  { %624 = vperm.xlu1 %914, %v606_v38  }
  0x44   :  { %619 = vperm.xlu0 %913, %v605_v37  }
  0x48   :  { %702 = vperm.xlu0 %913, %v699_v39  }
  0x81   :  { %v77_v43 = vpop.permute.xlu1 %76 }
  0x83   :  { %v67_v42 = vpop.permute.xlu0 %66 }
  0x85   :  { %v82_v45 = vpop.permute.xlu1 %81 }
  0x87   :  { %v72_v44 = vpop.permute.xlu0 %71 }
  0x89   :  { %v1149_v47 = vpop.permute.xlu1 %175 }
  0x8b   :  { %v1147_v46 = vpop.permute.xlu0 %170 }
  0x8d   :  { %v1153_v49 = vpop.permute.xlu1 %185 }
  0x8f   :  { %v1151_v48 = vpop.permute.xlu0 %180 }
  0x91   :  { %v347_v51 = vpop.permute.xlu1 %346 }
  0x92   :  { %vm391_vm4 = vcmp.eq.s32.totalorder %v347_v51, %v341_v5  ;;  %v921_v51 = vld [vmem:[%s1222_s8 + $0x8] sm:$0xff]  }
  0x93   :  { %v344_v50 = vpop.permute.xlu0 %343 }
  0x94   :  { %vm390_vm3 = vcmp.eq.s32.totalorder %v344_v50, %v341_v5 }
  0x95   :  { %v353_v63 = vpop.permute.xlu1 %352  ;;  %vm789_vm5 = vmpackc.low %vm391_vm4, %vm390_vm3 }
  0x96   :  { %vm393_vm7 = vcmp.eq.s32.totalorder %v353_v63, %v341_v5 }
  0x97   :  { %v350_v62 = vpop.permute.xlu0 %349 }
  0x98   :  { %vm392_vm6 = vcmp.eq.s32.totalorder %v350_v62, %v341_v5 }
  0x99   :  { %v359_v7 = vpop.permute.xlu1 %358  ;;  %vm791_vm8 = vmpackc.low %vm393_vm7, %vm392_vm6 }
  0x9a   :  { %vm395_vm10 = vcmp.eq.s32.totalorder %v359_v7, %v341_v5  ;;  %v923_v7 = vld [vmem:[%s1224_s10 + $0x8] sm:$0xff]  }
  0x9b   :  { %v356_v6 = vpop.permute.xlu0 %355 }
  0x9c   :  { %vm394_vm9 = vcmp.eq.s32.totalorder %v356_v6, %v341_v5 }
  0x9d   :  { %v365_v10 = vpop.permute.xlu1 %364  ;;  %vm793_vm11 = vmpackc.low %vm395_vm10, %vm394_vm9 }
  0x9e   :  { %vm397_vm13 = vcmp.eq.s32.totalorder %v365_v10, %v341_v5 }
  0x9f   :  { %v362_v9 = vpop.permute.xlu0 %361 }
  0xa0   :  { %vm396_vm12 = vcmp.eq.s32.totalorder %v362_v9, %v341_v5 }
  0xa1   :  { %v371_v13 = vpop.permute.xlu1 %370  ;;  %vm795_vm14 = vmpackc.low %vm397_vm13, %vm396_vm12  ;;  %vm951_vm12 = vmmov 0   ;;  %vm537_vm13 = vcmask 130048  }
  0xa2   :  { %vm399_vm0 = vcmp.eq.s32.totalorder %v371_v13, %v341_v5  ;;  %861 = vmatprep.mubr.msk.bf16.mxu0 %vm951_vm12, %v949_v41 }
  0xa3   :  { %v368_v12 = vpop.permute.xlu0 %367 }
  0xa4   :  { %vm398_vm15 = vcmp.eq.s32.totalorder %v368_v12, %v341_v5 }
  0xa5   :  { %v377_v15 = vpop.permute.xlu1 %376  ;;  %vm797_vm1 = vmpackc.low %vm399_vm0, %vm398_vm15 }
  0xa6   :  { %vm401_vm4 = vcmp.eq.s32.totalorder %v377_v15, %v341_v5 }
  0xa7   :  { %v374_v14 = vpop.permute.xlu0 %373 }
  0xa8   :  { %vm400_vm3 = vcmp.eq.s32.totalorder %v374_v14, %v341_v5 }
  0xa9   :  { %v383_v17 = vpop.permute.xlu1 %382 }
  0xaa   :  { %vm403_vm7 = vcmp.eq.s32.totalorder %v383_v17, %v341_v5 }
  0xab   :  { %v380_v16 = vpop.permute.xlu0 %379 }
  0xac   :  { %vm402_vm6 = vcmp.eq.s32.totalorder %v380_v16, %v341_v5 }
  0xad   :  { %v389_v19 = vpop.permute.xlu1 %388 }
  0xae   :  { %vm405_vm10 = vcmp.eq.s32.totalorder %v389_v19, %v341_v5 }
  0xaf   :  { %v386_v18 = vpop.permute.xlu0 %385 }
  0xb0   :  { %vm404_vm9 = vcmp.eq.s32.totalorder %v386_v18, %v341_v5 }
  0xb1   :  { %v272_v38 = vpop.permute.xlu1 %271 }
  0xb3   :  { %v267_v36 = vpop.permute.xlu0 %266 }
  0xd9   :  { %v847_v52 = vpop.f32.mrb[0].mxu0 }
  0xda   :  { %v148_v53 = vadd.f32 %v847_v52, %v77_v43  ;;  %v139_v54 = vpop.f32.mrb[1].mxu0  ;;  %v922_v52 = vld [vmem:[%s1224_s10] sm:$0xff]  }
  0xdb   :  { %v140_v55 = vadd.f32 %v139_v54, %v67_v42  ;;  %v848_v56 = vpop.f32.mrb[2].mxu0  ;;  %v515_v54 = vpop.permute.xlu1 %514 }
  0xdc   :  { %v151_v57 = vadd.f32 %v848_v56, %v82_v45  ;;  %v142_v58 = vpop.f32.mrb[3].mxu0  ;;  %v156_v60 = vmax.f32 %v148_v53, 0.0  ;;  %v920_v45 = vld [vmem:[%s1222_s8] sm:$0xff]   ;;  %v510_v53 = vpop.permute.xlu0 %509 }
  0xdd   :  { %v143_v59 = vadd.f32 %v142_v58, %v72_v44  ;;  %v154_v0 = vmax.f32 %v140_v55, 0.0 }
  0xde   :  { %v157_v61 = vmax.f32 %v151_v57, 0.0 }
  0xdf   :  { %v155_v1 = vmax.f32 %v143_v59, 0.0  ;;  %v525_v59 = vpop.permute.xlu1 %524 }
  0xe0   :  { %v159_v3 = vpack.c.bf16 %v157_v61, %v156_v60  ;;  %v520_v55 = vpop.permute.xlu0 %519 }
  0xe1   :  { %v158_v4 = vpack.c.bf16 %v155_v1, %v154_v0 }
  0xe3   :  { %849 = vmatprep.subr.bf16.mxu1 %v158_v4  ;;  %v615_v9 = vpop.permute.xlu1 %614 }
  0xe4   :  { %850 = vmatpush3.bf16.msra.mxu1 %v158_v4 }
  0xe5   :  { %851 = vmatprep.subr.bf16.mxu1 %v159_v3 }
  0xe7   :  { %v625_v14 = vpop.permute.xlu1 %624 }
  0xe8   :  { %852 = vmatpush3.bf16.msra.mxu1 %v159_v3 }
  0xe9   :  { %865 = vmatprep.subr.bf16.mxu1 %v949_v41 }
  0xeb   :  { %854 = vmatmul.mubr.msk.bf16.vlgmr.msra.gmra.mrb[0].mxu1 %vm198_vm2, %v918_v8  ;;  %v610_v8 = vpop.permute.xlu0 %609 }
  0xec   :  { %866 = vmatpush3.bf16.msk.msra.mxu1 %vm789_vm5, %v950_v11  ;;  %vm799_vm5 = vmpackc.low %vm401_vm4, %vm400_vm3  ;;  %881 = vmatprep.mubr.msk.bf16.mxu1 %vm951_vm12, %v949_v41 }
  0xed   :  { %867 = vmatprep.subr.bf16.mxu1 %v949_v41 }
  0xef   :  { %v620_v10 = vpop.permute.xlu0 %619 }
  0xf0   :  { %868 = vmatpush3.bf16.msk.msra.mxu1 %vm791_vm8, %v950_v11  ;;  %vm801_vm8 = vmpackc.low %vm403_vm7, %vm402_vm6 }
  0xf1   :  { %869 = vmatprep.subr.bf16.mxu1 %v949_v41 }
  0xf4   :  { %870 = vmatpush3.bf16.msk.msra.mxu1 %vm793_vm11, %v950_v11  ;;  %vm803_vm11 = vmpackc.low %vm405_vm10, %vm404_vm9 }
  0xf5   :  { %871 = vmatprep.subr.bf16.mxu1 %v949_v41 }
  0xf8   :  { %872 = vmatpush3.bf16.msk.msra.mxu1 %vm795_vm14, %v950_v11 }
  0xf9   :  { %873 = vmatprep.subr.bf16.mxu1 %v949_v41 }
  0xfc   :  { %874 = vmatpush3.bf16.msk.msra.mxu1 %vm797_vm1, %v950_v11 }
  0xfd   :  { %875 = vmatprep.subr.bf16.mxu1 %v949_v41 }
 0x100   :  { %876 = vmatpush3.bf16.msk.msra.mxu1 %vm799_vm5, %v950_v11 }
 0x101   :  { %877 = vmatprep.subr.bf16.mxu1 %v949_v41 }
 0x104   :  { %878 = vmatpush3.bf16.msk.msra.mxu1 %vm801_vm8, %v950_v11 }
 0x105   :  { %879 = vmatprep.subr.bf16.mxu1 %v949_v41 }
 0x108   :  { %880 = vmatpush3.bf16.msk.msra.mxu1 %vm803_vm11, %v950_v11 }
 0x1be   :  { %v855_v20 = vpop.f32.mrb[0].mxu1 }
 0x1bf   :  { %v248_v21 = vadd.f32 %v855_v20, %v1151_v48  ;;  %v239_v22 = vpop.f32.mrb[1].mxu1 }
 0x1c0   :  { %v240_v23 = vadd.f32 %v239_v22, %v1147_v46  ;;  %v856_v24 = vpop.f32.mrb[2].mxu1 }
 0x1c1   :  { %v251_v25 = vadd.f32 %v856_v24, %v1153_v49  ;;  %v242_v26 = vpop.f32.mrb[3].mxu1  ;;  %v256_v28 = vmax.f32 %v248_v21, 0.0 }
 0x1c2   :  { %v243_v27 = vadd.f32 %v242_v26, %v1149_v47  ;;  %v254_v30 = vmax.f32 %v240_v23, 0.0  ;;  %v696_v26 = vld [vmem:[%s1226_s12] sm:$0xf] }
 0x1c3   :  { %v257_v29 = vmax.f32 %v251_v25, 0.0 }
 0x1c4   :  { %v255_v31 = vmax.f32 %v243_v27, 0.0  ;;  %v703_v27 = vpop.permute.xlu0 %702 }
 0x1c5   :  { %v259_v32 = vpack.c.bf16 %v257_v29, %v256_v28 }
 0x1c6   :  { %v258_v33 = vpack.c.bf16 %v255_v31, %v254_v30 }
 0x1c8   :  { %858 = vmatpush3.bf16.msra.mxu0 %v258_v33 }
 0x1c9   :  { %859 = vmatprep.subr.bf16.mxu0 %v949_v41 }
 0x1cc   :  { %860 = vmatpush3.bf16.msra.mxu0 %v259_v32 }
 0x1cf   :  { %862 = vmatmul.mubr.msk.bf16.vlgmr.msra.gmra.mrb[4].mxu0 %vm198_vm2, %v919_v34 }
 0x1d0   :  { %887 = vmatprep.mubr.msk.bf16.mxu0 %vm537_vm13, %v920_v45 }
 0x2a2   :  { %v316_v35 = vpop.f32.mrb[4].mxu0 }
 0x2a3   :  { %v863_v37 = vpop.f32.mrb[5].mxu0  ;;  %v317_v40 = vadd.f32 %v316_v35, %v267_v36 }
 0x2a4   :  { %v319_v39 = vpop.f32.mrb[6].mxu0 }
 0x2a5   :  { %v320_v42 = vadd.f32 %v319_v39, %v272_v38  ;;  %v864_v43 = vpop.f32.mrb[7].mxu0 }
 0x2a7   :  { %v323_v44 = vpack.c.bf16 %v320_v42, %v317_v40 }
 0x2a9   :  { %882 = vmatmul.mubr.bf16.vlgmr.msra.gmra.mrb[4].mxu1 %v323_v44 }
 0x37c   :  { %v482_v46 = vpop.f32.mrb[4].mxu1 }
 0x37d   :  { %v883_v47 = vpop.f32.mrb[5].mxu1 }
 0x37e   :  { %v485_v48 = vpop.f32.mrb[6].mxu1 }
 0x37f   :  { %v502_v49 = vpack.c.bf16 %v485_v48, %v482_v46  ;;  %v884_v50 = vpop.f32.mrb[7].mxu1 }
 0x381   :  { %885 = vmatprep.subr.bf16.mxu0 %v502_v49 }
 0x382   :  { %886 = vmatpush3.bf16.msra.mxu0 %v502_v49 }
 0x385   :  { %888 = vmatmul.mubr.msk.bf16.vlgmr.msra.gmra.mrb[8].mxu0 %vm537_vm13, %v921_v51 }
 0x386   :  { %895 = vmatprep.mubr.msk.bf16.mxu0 %vm198_vm2, %v922_v52 }
 0x458   :  { %v889_v56 = vpop.f32.mrb[8].mxu0 }
 0x459   :  { %v587_v57 = vadd.f32 %v889_v56, %v520_v55  ;;  %v578_v58 = vpop.f32.mrb[9].mxu0 }
 0x45a   :  { %v579_v60 = vadd.f32 %v578_v58, %v510_v53  ;;  %v890_v61 = vpop.f32.mrb[10].mxu0 }
 0x45b   :  { %v590_v62 = vadd.f32 %v890_v61, %v525_v59  ;;  %v581_v63 = vpop.f32.mrb[11].mxu0  ;;  %v595_v1 = vmax.f32 %v587_v57, 0.0 }
 0x45c   :  { %v582_v0 = vadd.f32 %v581_v63, %v515_v54  ;;  %v593_v3 = vmax.f32 %v579_v60, 0.0 }
 0x45d   :  { %v596_v2 = vmax.f32 %v590_v62, 0.0 }
 0x45e   :  { %v594_v4 = vmax.f32 %v582_v0, 0.0 }
 0x45f   :  { %v602_v5 = vpack.c.bf16 %v596_v2, %v595_v1 }
 0x460   :  { %v601_v6 = vpack.c.bf16 %v594_v4, %v593_v3 }
 0x462   :  { %891 = vmatprep.subr.bf16.mxu0 %v601_v6 }
 0x463   :  { %892 = vmatpush3.bf16.msra.mxu0 %v601_v6 }
 0x464   :  { %893 = vmatprep.subr.bf16.mxu0 %v602_v5 }
 0x467   :  { %894 = vmatpush3.bf16.msra.mxu0 %v602_v5 }
 0x468   :  { %899 = vmatprep.subr.bf16.mxu0 %v949_v41 }
 0x46a   :  { %896 = vmatmul.mubr.msk.bf16.vlgmr.msra.gmra.mrb[12].mxu0 %vm198_vm2, %v923_v7 }
 0x46b   :  { %903 = vmatprep.mubr.msk.bf16.mxu0 %vm951_vm12, %v949_v41 }
 0x53d   :  { %v897_v11 = vpop.f32.mrb[12].mxu0 }
 0x53e   :  { %v686_v12 = vadd.f32 %v897_v11, %v620_v10  ;;  %v677_v13 = vpop.f32.mrb[13].mxu0 }
 0x53f   :  { %v678_v15 = vadd.f32 %v677_v13, %v610_v8  ;;  %v898_v16 = vpop.f32.mrb[14].mxu0 }
 0x540   :  { %v689_v17 = vadd.f32 %v898_v16, %v625_v14  ;;  %v680_v18 = vpop.f32.mrb[15].mxu0  ;;  %v694_v20 = vmax.f32 %v686_v12, 0.0 }
 0x541   :  { %v681_v19 = vadd.f32 %v680_v18, %v615_v9  ;;  %v692_v22 = vmax.f32 %v678_v15, 0.0 }
 0x542   :  { %v695_v21 = vmax.f32 %v689_v17, 0.0 }
 0x543   :  { %v693_v23 = vmax.f32 %v681_v19, 0.0 }
 0x544   :  { %v698_v24 = vpack.c.bf16 %v695_v21, %v694_v20 }
 0x545   :  { %v697_v25 = vpack.c.bf16 %v693_v23, %v692_v22 }
 0x547   :  { %900 = vmatpush3.bf16.msra.mxu0 %v697_v25 }
 0x548   :  { %901 = vmatprep.subr.bf16.mxu0 %v949_v41 }
 0x54b   :  { %902 = vmatpush3.bf16.msra.mxu0 %v698_v24 }
 0x54e   :  { %904 = vmatmul.mubr.msk.bf16.vlgmr.msra.gmra.mrb[16].mxu0 %vm198_vm2, %v696_v26 }
 0x621   :  { %v742_v28 = vpop.f32.mrb[16].mxu0 }
 0x622   :  { %v743_v29 = vadd.f32 %v742_v28, %v703_v27  ;;  %v905_v30 = vpop.f32.mrb[17].mxu0 }
 0x623   :  { %v745_v31 = vpop.f32.mrb[18].mxu0 }
 0x624   :  { %748 = vst [vmem:[#allocation3] sm:$0xff] %v743_v29  ;;  %v906_v32 = vpop.f32.mrb[19].mxu0 }
 0x625   :  { %935 = shalt.err (!%p932_p4)
}
 0x626   :  { %s936_s19 = scalar_lea.hbm %s1228_s14, 128 }
 0x627   :  { %p937_p5 = scmp.ne.s32.totalorder %s1228_s14, %s936_s19  ;;  %p940_p6 = scmp.lt.u32.totalorder %s936_s19, %s1228_s14 }
 0x629   :  { %p942_p7 = pnand %p940_p6, %p937_p5 }
 0x62b   :  { %945 = shalt.err (!%p942_p7)
}
 0x62c   :  { %758 = dma.vmem_to_hbm [thread:$0]  %s756_s17, 128, %s1228_s14, [#allocation4]  }
 0x62d   :  { %946 = dma.done.wait [#allocation4], 128  }
 0x62e   :  { %947 = vsyncadd [#allocation4], 4294967168 }
 0x62f   :  { %762 = vsyncpa [#allocation4], 1 }

</bundles_post_ra>
